<compile_context>
chip_gen: v6e
topology: v6e:2x2x1
jax: 0.10.0
libtpu: 0.0.40
codegen_flags: <defaults>
</compile_context>

<pallas_src>
import jax
import jax.numpy as jnp
from jax import lax
from jax.experimental import pallas as pl
from jax.experimental.pallas import tpu as pltpu


def _round_up(x, m):
    return ((x + m - 1) // m) * m


# ---------------------------------------------------------------------------
# Pallas kernel: full LM forward for one batch tile (batch on lanes).
# ---------------------------------------------------------------------------
def _make_kernel(n_real, n_pad, dim):
    """Kernel body as a closure over the static problem sizes."""
    n_chunks = n_pad // 8

    def kernel(w_ref, logf_ref, fek_ref, out_ref, xi_sc, cntge_sc):
        # w_ref   : (D, TB)      weight tile, transposed (batch on lanes)
        # logf_ref: (N_pad, D)   log empirical CDF (whole array, VMEM resident)
        # fek_ref : (D, 1)       linear correction term (whole array)
        # out_ref : (1, TB)      lane-dense output row
        # xi_sc   : (N_pad, TB)  VMEM scratch: staged xi values
        # cntge_sc: (N_pad, TB)  VMEM scratch: per-element ">= count" rows
        w_t = w_ref[...]                                    # (D, TB)
        tb = w_t.shape[1]

        # One exact reciprocal per (d, b); the N-fold divides become multiplies.
        inv_w = 1.0 / w_t                                   # (D, TB)

        # xi[j, b] = max_d logF[j, d] * inv_w[d, b]  — running max over d
        # (no (TB, D, N) 3-D intermediate; D is small and unrolled).
        xi = logf_ref[:, 0:1] * inv_w[0:1, :]               # (N_pad, TB)
        for d in range(1, dim):
            xi = jnp.maximum(xi, logf_ref[:, d:d + 1] * inv_w[d:d + 1, :])

        # Padded sample rows (j >= n_real) -> +inf: they never count as
        # "smaller" for real rows; their own contribution is masked below.
        if n_pad != n_real:
            j_idx = lax.broadcasted_iota(jnp.int32, (n_pad, 1), 0)
            valid_j = j_idx < n_real                        # (N_pad, 1)
            xi = jnp.where(valid_j, xi, jnp.inf)

        xi_sc[...] = xi                                     # stage for row reads

        # --- O(N^2) counting: one <= mask per k, chunked by 8 (aligned) ------
        #   mask_k[j, b] = (v_k <= v_j)
        #   sum over k (elementwise)  -> cnt_le[j]  (VALU adds)
        #   sum over j (sublane/XLU)  -> cnt_ge[k]  (stored to scratch row k)
        def body(c8, cnt_le):
            base = pl.multiple_of(c8 * 8, 8)
            chunk = xi_sc[pl.ds(base, 8), :]                # (8, TB) aligned load
            rows = []
            for i in range(8):
                vk = chunk[i:i + 1, :]                      # (1, TB) row k=base+i
                mask = (vk <= xi).astype(jnp.float32)       # (N_pad, TB)
                rows.append(jnp.sum(mask, axis=0, keepdims=True))   # XLU reduce
                cnt_le = cnt_le + mask                      # VALU accumulate
            cntge_sc[pl.ds(base, 8), :] = jnp.concatenate(rows, axis=0)
            return cnt_le

        cnt_le = lax.fori_loop(0, n_chunks, body,
                               jnp.zeros((n_pad, tb), jnp.float32))

        # Recover strictly-less / tie counts (padded +inf rows fall on the
        # correct side automatically; counts are exact in f32).
        c = float(n_pad) - cntge_sc[...]                    # #{k: v_k <  v_j}
        e = cnt_le - c                                      # #{k: v_k == v_j} >= 1

        # Tie-group identity: sorted(v).exp() @ log_mult
        #   == sum_j exp(v_j) * log((c_j + e_j) / max(c_j, 1)) / e_j
        mult = jnp.log((c + e) / jnp.maximum(c, 1.0)) / e   # (N_pad, TB)
        contrib = jnp.exp(xi) * mult
        if n_pad != n_real:
            contrib = jnp.where(valid_j, contrib, 0.0)
        f_w = jnp.sum(contrib, axis=0, keepdims=True)       # (1, TB)

        # Linear correction w @ f_ek as a VPU sublane reduce (no 1-lane matmul).
        lin = jnp.sum(w_t * fek_ref[...], axis=0, keepdims=True)   # (1, TB)

        out_ref[...] = (f_w + lin).astype(out_ref.dtype)

    return kernel


# ---------------------------------------------------------------------------
# Wrapper
# ---------------------------------------------------------------------------
def bdv_lm_forward(w, logF, f_ek, *, tb=None,
                   vmem_limit_bytes=48 * 1024 * 1024):
    """w: (B, D), logF: (D, N), f_ek: (D,). Returns (B,) float32.

    tb: batch tile (multiple of 128; batch is laid on the lane axis).  Default:
        128, raised to 512 when the padded batch is >= 1024 so big batches use
        fewer grid steps while small batches still yield >= 2 parallel steps.
    """
    w = jnp.asarray(w, jnp.float32)
    logF = jnp.asarray(logF, jnp.float32)
    B, D = w.shape
    N = logF.shape[1]

    # Batch padded to the tile and transposed: batch on lanes inside the kernel.
    b128 = _round_up(B, 128)
    if tb is None:
        tb = 512 if b128 >= 1024 else 128
    tb = max(128, (int(tb) // 128) * 128)
    b_pad = _round_up(B, tb)
    if b_pad != B:
        # pad with ones -> finite garbage columns, discarded after the call
        w = jnp.concatenate([w, jnp.ones((b_pad - B, D), jnp.float32)], axis=0)
    w_t = w.T                                               # (D, B_pad)

    # Samples padded to a sublane multiple; padded rows get a safe finite
    # negative value (never 0: 0 * inf would NaN before the in-kernel mask).
    n_pad = _round_up(N, 8)
    logf_nd = logF.T                                        # (N, D)
    if n_pad != N:
        logf_nd = jnp.concatenate(
            [logf_nd, jnp.full((n_pad - N, D), -1.0, jnp.float32)], axis=0)

    fek2 = jnp.asarray(f_ek, jnp.float32).reshape(D, 1)

    kernel = _make_kernel(N, n_pad, D)

    out = pl.pallas_call(
        kernel,
        out_shape=jax.ShapeDtypeStruct((1, b_pad), jnp.float32),
        grid_spec=pltpu.PrefetchScalarGridSpec(
            num_scalar_prefetch=0,
            grid=(b_pad // tb,),
            in_specs=[
                # per-step weight tile (pipelined)
                pl.BlockSpec((D, tb), lambda i: (0, i)),
                # grid-constant operands: whole-array, single-buffered in VMEM
                pl.BlockSpec(memory_space=pltpu.MemorySpace.VMEM),   # logF (N_pad, D)
                pl.BlockSpec(memory_space=pltpu.MemorySpace.VMEM),   # f_ek (D, 1)
            ],
            out_specs=pl.BlockSpec((1, tb), lambda i: (0, i)),       # lane-dense
            scratch_shapes=[
                pltpu.VMEM((n_pad, tb), jnp.float32),   # xi staging
                pltpu.VMEM((n_pad, tb), jnp.float32),   # cnt_ge rows
            ],
        ),
        compiler_params=pltpu.CompilerParams(
            dimension_semantics=("parallel",),   # shards batch steps across TCs
            vmem_limit_bytes=vmem_limit_bytes),
    )(w_t, logf_nd, fek2)
    return out[0, :B]


# ---------------------------------------------------------------------------
# Init-time glue (MetaCE / BDVEstimator __init__): build logF from samples.
# The empirical-CDF construction (double argsort) stays in plain JAX.
# ---------------------------------------------------------------------------
def compute_logF(samples):
    """samples: (n_samples, dim) -> logF: (dim, n_samples), float32."""
    n, _ = samples.shape
    s = samples.T                                       # (dim, n)
    order = jnp.argsort(s, axis=1)                      # ascending
    ranks = jnp.argsort(order, axis=1).astype(jnp.float32)
    F = (ranks + 1.0) / (n + 1.0)                       # est_F = 'n+1'
    return jnp.log(F)


def make_bdv_lm(samples):
    """Builds (logF, f_ek) exactly as BDVEstimatorLM.__init__ does."""
    logF = compute_logF(samples)
    dim = samples.shape[1]
    eye = jnp.eye(dim, dtype=jnp.float32)
    zeros_fek = jnp.zeros((dim,), jnp.float32)
    f_ek = 1.0 - bdv_lm_forward(eye, logF, zeros_fek)   # kernel reused for f_ek
    return logF, f_ek


# ---------------------------------------------------------------------------
# Pure-JAX reference (mirrors the PyTorch code) for correctness checking.
# ---------------------------------------------------------------------------
def ref_bdv(w, logF):
    n = logF.shape[1]
    ratio = logF[None, :, :] / w[:, :, None]
    xi_lu = jnp.max(ratio, axis=1)
    xi = jnp.exp(jnp.sort(xi_lu, axis=1))
    i = jnp.arange(n, dtype=jnp.float32)
    log_mult = jnp.where(i >= 1, jnp.log1p(1.0 / jnp.maximum(i, 1.0)), 0.0)
    return xi @ log_mult


def ref_lm(w, logF, f_ek):
    return ref_bdv(w, logF) + w @ f_ek


# ---------------------------------------------------------------------------
if __name__ == "__main__":
    key = jax.random.PRNGKey(0)
    k_samples, k_w = jax.random.split(key)

    n_samples, dim, batch = 16, 4, 8
    # deterministic "training" samples defining the empirical copula
    samples = jax.random.normal(k_samples, (n_samples, dim), dtype=jnp.float32)

    logF, f_ek = make_bdv_lm(samples)

    # query weight vectors (positive, as in typical extreme-value usage)
    w = jax.random.uniform(k_w, (batch, dim), dtype=jnp.float32,
                           minval=0.1, maxval=1.0)

    out = bdv_lm_forward(w, logF, f_ek)
    out = jax.block_until_ready(out)

    # correctness vs. pure-JAX reference of the PyTorch forward
    f_ek_ref = 1.0 - ref_bdv(jnp.eye(dim, dtype=jnp.float32), logF)
    expected = ref_lm(w, logF, f_ek_ref)
    assert out.shape == (batch,)
    assert jnp.allclose(out, expected, rtol=1e-4, atol=1e-5), (out, expected)
    assert jnp.allclose(f_ek, f_ek_ref, rtol=1e-4, atol=1e-5), (f_ek, f_ek_ref)

    print("KERNEL_OK")
</pallas_src>

<mosaic_0001>
module attributes {stable_mosaic.version = 11 : i64} {
  func.func @kernel(%arg0: i32, %arg1: memref<4x128xf32, #tpu.memory_space<vmem>>, %arg2: memref<16x4xf32, #tpu.memory_space<vmem>>, %arg3: memref<4x1xf32, #tpu.memory_space<vmem>>, %arg4: memref<1x128xf32, #tpu.memory_space<vmem>>, %arg5: memref<16x128xf32, #tpu.memory_space<vmem>>, %arg6: memref<16x128xf32, #tpu.memory_space<vmem>>) attributes {dimension_semantics = [#tpu.dimension_semantics<parallel>], iteration_bounds = array<i64: 1>, scalar_prefetch = 0 : i64, scratch_operands = 2 : i64, tpu.core_type = #tpu.core_type<tc>, window_params = [{transform_indices = @transform_0, window_bounds = array<i64: 4, 128>}, {pipeline_mode = #tpu.pipeline_mode<synchronous>, transform_indices = @transform_1, window_bounds = array<i64: 16, 4>}, {pipeline_mode = #tpu.pipeline_mode<synchronous>, transform_indices = @transform_2, window_bounds = array<i64: 4, 1>}, {transform_indices = @transform_3, window_bounds = array<i64: 1, 128>}]} {
    %c0 = arith.constant 0 : index
    %c0_0 = arith.constant 0 : index
    %0 = vector.load %arg1[%c0, %c0_0] : memref<4x128xf32, #tpu.memory_space<vmem>>, vector<4x128xf32>
    %cst = arith.constant 1.000000e+00 : f32
    %1 = vector.broadcast %cst : f32 to vector<4x128xf32>
    %2 = arith.divf %1, %0 : vector<4x128xf32>
    %c0_1 = arith.constant 0 : index
    %c0_2 = arith.constant 0 : index
    %3 = vector.load %arg2[%c0_1, %c0_2] : memref<16x4xf32, #tpu.memory_space<vmem>>, vector<16x1xf32>
    %4 = vector.extract_strided_slice %2 {offsets = [0, 0], sizes = [1, 128], strides = [1, 1]} : vector<4x128xf32> to vector<1x128xf32>
    %5 = vector.broadcast %3 : vector<16x1xf32> to vector<16x128xf32>
    %6 = vector.broadcast %4 : vector<1x128xf32> to vector<16x128xf32>
    %7 = arith.mulf %5, %6 : vector<16x128xf32>
    %c0_3 = arith.constant 0 : index
    %c1 = arith.constant 1 : index
    %8 = vector.load %arg2[%c0_3, %c1] : memref<16x4xf32, #tpu.memory_space<vmem>>, vector<16x1xf32>
    %9 = vector.extract_strided_slice %2 {offsets = [1, 0], sizes = [1, 128], strides = [1, 1]} : vector<4x128xf32> to vector<1x128xf32>
    %10 = vector.broadcast %8 : vector<16x1xf32> to vector<16x128xf32>
    %11 = vector.broadcast %9 : vector<1x128xf32> to vector<16x128xf32>
    %12 = arith.mulf %10, %11 : vector<16x128xf32>
    %13 = arith.maximumf %7, %12 : vector<16x128xf32>
    %c0_4 = arith.constant 0 : index
    %c2 = arith.constant 2 : index
    %14 = vector.load %arg2[%c0_4, %c2] : memref<16x4xf32, #tpu.memory_space<vmem>>, vector<16x1xf32>
    %15 = vector.extract_strided_slice %2 {offsets = [2, 0], sizes = [1, 128], strides = [1, 1]} : vector<4x128xf32> to vector<1x128xf32>
    %16 = vector.broadcast %14 : vector<16x1xf32> to vector<16x128xf32>
    %17 = vector.broadcast %15 : vector<1x128xf32> to vector<16x128xf32>
    %18 = arith.mulf %16, %17 : vector<16x128xf32>
    %19 = arith.maximumf %13, %18 : vector<16x128xf32>
    %c0_5 = arith.constant 0 : index
    %c3 = arith.constant 3 : index
    %20 = vector.load %arg2[%c0_5, %c3] : memref<16x4xf32, #tpu.memory_space<vmem>>, vector<16x1xf32>
    %21 = vector.extract_strided_slice %2 {offsets = [3, 0], sizes = [1, 128], strides = [1, 1]} : vector<4x128xf32> to vector<1x128xf32>
    %22 = vector.broadcast %20 : vector<16x1xf32> to vector<16x128xf32>
    %23 = vector.broadcast %21 : vector<1x128xf32> to vector<16x128xf32>
    %24 = arith.mulf %22, %23 : vector<16x128xf32>
    %25 = arith.maximumf %19, %24 : vector<16x128xf32>
    %c0_6 = arith.constant 0 : index
    %c0_7 = arith.constant 0 : index
    %26 = vector.load %arg5[%c0_6, %c0_7] : memref<16x128xf32, #tpu.memory_space<vmem>>, vector<16x128xf32>
    tpu.vector_store %arg5[%c0_6, %c0_7], %25 {strides = array<i32>} : memref<16x128xf32, #tpu.memory_space<vmem>>, vector<16x128xf32>,
    %cst_8 = arith.constant 0.000000e+00 : f32
    %27 = vector.broadcast %cst_8 : f32 to vector<16x128xf32>
    %c0_i32 = arith.constant 0 : i32
    %c2_i32 = arith.constant 2 : i32
    %28 = arith.addi %c0_i32, %c2_i32 : i32
    %c1_i32 = arith.constant 1 : i32
    %29 = scf.for %arg7 = %c0_i32 to %28 step %c1_i32 iter_args(%arg8 = %27) -> (vector<16x128xf32>)  : i32 {
      %c8_i32 = arith.constant 8 : i32
      %51 = arith.muli %arg7, %c8_i32 : i32
      %52 = tpu.assume_multiple %51, 8 : i32
      %53 = arith.index_cast %52 : i32 to index
      %c0_20 = arith.constant 0 : index
      %54 = vector.load %arg5[%53, %c0_20] : memref<16x128xf32, #tpu.memory_space<vmem>>, vector<8x128xf32>
      %55 = vector.extract_strided_slice %54 {offsets = [0, 0], sizes = [1, 128], strides = [1, 1]} : vector<8x128xf32> to vector<1x128xf32>
      %56 = vector.broadcast %55 : vector<1x128xf32> to vector<16x128xf32>
      %57 = arith.cmpf ole, %56, %25 : vector<16x128xf32>
      %58 = arith.extui %57 : vector<16x128xi1> to vector<16x128xi32>
      %59 = arith.sitofp %58 : vector<16x128xi32> to vector<16x128xf32>
      %cst_21 = arith.constant dense<0.000000e+00> : vector<128xf32>
      %60 = vector.multi_reduction <add>, %59, %cst_21 [0] : vector<16x128xf32> to vector<128xf32>
      %61 = vector.shape_cast %60 : vector<128xf32> to vector<1x128xf32>
      %62 = arith.addf %arg8, %59 : vector<16x128xf32>
      %63 = vector.extract_strided_slice %54 {offsets = [1, 0], sizes = [1, 128], strides = [1, 1]} : vector<8x128xf32> to vector<1x128xf32>
      %64 = vector.broadcast %63 : vector<1x128xf32> to vector<16x128xf32>
      %65 = arith.cmpf ole, %64, %25 : vector<16x128xf32>
      %66 = arith.extui %65 : vector<16x128xi1> to vector<16x128xi32>
      %67 = arith.sitofp %66 : vector<16x128xi32> to vector<16x128xf32>
      %cst_22 = arith.constant dense<0.000000e+00> : vector<128xf32>
      %68 = vector.multi_reduction <add>, %67, %cst_22 [0] : vector<16x128xf32> to vector<128xf32>
      %69 = vector.shape_cast %68 : vector<128xf32> to vector<1x128xf32>
      %70 = arith.addf %62, %67 : vector<16x128xf32>
      %71 = vector.extract_strided_slice %54 {offsets = [2, 0], sizes = [1, 128], strides = [1, 1]} : vector<8x128xf32> to vector<1x128xf32>
      %72 = vector.broadcast %71 : vector<1x128xf32> to vector<16x128xf32>
      %73 = arith.cmpf ole, %72, %25 : vector<16x128xf32>
      %74 = arith.extui %73 : vector<16x128xi1> to vector<16x128xi32>
      %75 = arith.sitofp %74 : vector<16x128xi32> to vector<16x128xf32>
      %cst_23 = arith.constant dense<0.000000e+00> : vector<128xf32>
      %76 = vector.multi_reduction <add>, %75, %cst_23 [0] : vector<16x128xf32> to vector<128xf32>
      %77 = vector.shape_cast %76 : vector<128xf32> to vector<1x128xf32>
      %78 = arith.addf %70, %75 : vector<16x128xf32>
      %79 = vector.extract_strided_slice %54 {offsets = [3, 0], sizes = [1, 128], strides = [1, 1]} : vector<8x128xf32> to vector<1x128xf32>
      %80 = vector.broadcast %79 : vector<1x128xf32> to vector<16x128xf32>
      %81 = arith.cmpf ole, %80, %25 : vector<16x128xf32>
      %82 = arith.extui %81 : vector<16x128xi1> to vector<16x128xi32>
      %83 = arith.sitofp %82 : vector<16x128xi32> to vector<16x128xf32>
      %cst_24 = arith.constant dense<0.000000e+00> : vector<128xf32>
      %84 = vector.multi_reduction <add>, %83, %cst_24 [0] : vector<16x128xf32> to vector<128xf32>
      %85 = vector.shape_cast %84 : vector<128xf32> to vector<1x128xf32>
      %86 = arith.addf %78, %83 : vector<16x128xf32>
      %87 = vector.extract_strided_slice %54 {offsets = [4, 0], sizes = [1, 128], strides = [1, 1]} : vector<8x128xf32> to vector<1x128xf32>
      %88 = vector.broadcast %87 : vector<1x128xf32> to vector<16x128xf32>
      %89 = arith.cmpf ole, %88, %25 : vector<16x128xf32>
      %90 = arith.extui %89 : vector<16x128xi1> to vector<16x128xi32>
      %91 = arith.sitofp %90 : vector<16x128xi32> to vector<16x128xf32>
      %cst_25 = arith.constant dense<0.000000e+00> : vector<128xf32>
      %92 = vector.multi_reduction <add>, %91, %cst_25 [0] : vector<16x128xf32> to vector<128xf32>
      %93 = vector.shape_cast %92 : vector<128xf32> to vector<1x128xf32>
      %94 = arith.addf %86, %91 : vector<16x128xf32>
      %95 = vector.extract_strided_slice %54 {offsets = [5, 0], sizes = [1, 128], strides = [1, 1]} : vector<8x128xf32> to vector<1x128xf32>
      %96 = vector.broadcast %95 : vector<1x128xf32> to vector<16x128xf32>
      %97 = arith.cmpf ole, %96, %25 : vector<16x128xf32>
      %98 = arith.extui %97 : vector<16x128xi1> to vector<16x128xi32>
      %99 = arith.sitofp %98 : vector<16x128xi32> to vector<16x128xf32>
      %cst_26 = arith.constant dense<0.000000e+00> : vector<128xf32>
      %100 = vector.multi_reduction <add>, %99, %cst_26 [0] : vector<16x128xf32> to vector<128xf32>
      %101 = vector.shape_cast %100 : vector<128xf32> to vector<1x128xf32>
      %102 = arith.addf %94, %99 : vector<16x128xf32>
      %103 = vector.extract_strided_slice %54 {offsets = [6, 0], sizes = [1, 128], strides = [1, 1]} : vector<8x128xf32> to vector<1x128xf32>
      %104 = vector.broadcast %103 : vector<1x128xf32> to vector<16x128xf32>
      %105 = arith.cmpf ole, %104, %25 : vector<16x128xf32>
      %106 = arith.extui %105 : vector<16x128xi1> to vector<16x128xi32>
      %107 = arith.sitofp %106 : vector<16x128xi32> to vector<16x128xf32>
      %cst_27 = arith.constant dense<0.000000e+00> : vector<128xf32>
      %108 = vector.multi_reduction <add>, %107, %cst_27 [0] : vector<16x128xf32> to vector<128xf32>
      %109 = vector.shape_cast %108 : vector<128xf32> to vector<1x128xf32>
      %110 = arith.addf %102, %107 : vector<16x128xf32>
      %111 = vector.extract_strided_slice %54 {offsets = [7, 0], sizes = [1, 128], strides = [1, 1]} : vector<8x128xf32> to vector<1x128xf32>
      %112 = vector.broadcast %111 : vector<1x128xf32> to vector<16x128xf32>
      %113 = arith.cmpf ole, %112, %25 : vector<16x128xf32>
      %114 = arith.extui %113 : vector<16x128xi1> to vector<16x128xi32>
      %115 = arith.sitofp %114 : vector<16x128xi32> to vector<16x128xf32>
      %cst_28 = arith.constant dense<0.000000e+00> : vector<128xf32>
      %116 = vector.multi_reduction <add>, %115, %cst_28 [0] : vector<16x128xf32> to vector<128xf32>
      %117 = vector.shape_cast %116 : vector<128xf32> to vector<1x128xf32>
      %118 = arith.addf %110, %115 : vector<16x128xf32>
      %119 = tpu.concatenate %61, %69, %77, %85, %93, %101, %109, %117 in 0 : vector<1x128xf32>, vector<1x128xf32>, vector<1x128xf32>, vector<1x128xf32>, vector<1x128xf32>, vector<1x128xf32>, vector<1x128xf32>, vector<1x128xf32> -> vector<8x128xf32>
      %120 = arith.index_cast %52 : i32 to index
      %c0_29 = arith.constant 0 : index
      %121 = vector.load %arg6[%120, %c0_29] : memref<16x128xf32, #tpu.memory_space<vmem>>, vector<8x128xf32>
      tpu.vector_store %arg6[%120, %c0_29], %119 {strides = array<i32>} : memref<16x128xf32, #tpu.memory_space<vmem>>, vector<8x128xf32>,
      scf.yield %118 : vector<16x128xf32>
    }
    %c2_i32_9 = arith.constant 2 : i32
    %c0_10 = arith.constant 0 : index
    %c0_11 = arith.constant 0 : index
    %30 = vector.load %arg6[%c0_10, %c0_11] : memref<16x128xf32, #tpu.memory_space<vmem>>, vector<16x128xf32>
    %cst_12 = arith.constant 1.600000e+01 : f32
    %31 = vector.broadcast %cst_12 : f32 to vector<16x128xf32>
    %32 = arith.subf %31, %30 : vector<16x128xf32>
    %33 = arith.subf %29, %32 : vector<16x128xf32>
    %34 = arith.addf %32, %33 : vector<16x128xf32>
    %cst_13 = arith.constant 1.000000e+00 : f32
    %35 = vector.broadcast %cst_13 : f32 to vector<16x128xf32>
    %36 = arith.maximumf %32, %35 : vector<16x128xf32>
    %37 = arith.divf %34, %36 : vector<16x128xf32>
    %38 = math.log %37 : vector<16x128xf32>
    %39 = arith.divf %38, %33 : vector<16x128xf32>
    %40 = math.exp %25 : vector<16x128xf32>
    %41 = arith.mulf %40, %39 : vector<16x128xf32>
    %cst_14 = arith.constant dense<0.000000e+00> : vector<128xf32>
    %42 = vector.multi_reduction <add>, %41, %cst_14 [0] : vector<16x128xf32> to vector<128xf32>
    %43 = vector.shape_cast %42 : vector<128xf32> to vector<1x128xf32>
    %c0_15 = arith.constant 0 : index
    %c0_16 = arith.constant 0 : index
    %44 = vector.load %arg3[%c0_15, %c0_16] : memref<4x1xf32, #tpu.memory_space<vmem>>, vector<4x1xf32>
    %45 = vector.broadcast %44 : vector<4x1xf32> to vector<4x128xf32>
    %46 = arith.mulf %0, %45 : vector<4x128xf32>
    %cst_17 = arith.constant dense<0.000000e+00> : vector<128xf32>
    %47 = vector.multi_reduction <add>, %46, %cst_17 [0] : vector<4x128xf32> to vector<128xf32>
    %48 = vector.shape_cast %47 : vector<128xf32> to vector<1x128xf32>
    %49 = arith.addf %43, %48 : vector<1x128xf32>
    %c0_18 = arith.constant 0 : index
    %c0_19 = arith.constant 0 : index
    %50 = vector.load %arg4[%c0_18, %c0_19] : memref<1x128xf32, #tpu.memory_space<vmem>>, vector<1x128xf32>
    tpu.vector_store %arg4[%c0_18, %c0_19], %49 {strides = array<i32>} : memref<1x128xf32, #tpu.memory_space<vmem>>, vector<1x128xf32>,
    return
  }
  func.func @transform_0(%arg0: i32) -> (i32, i32) {
    %c0_i32 = arith.constant 0 : i32
    %c0_i32_0 = arith.constant 0 : i32
    return %c0_i32, %arg0 : i32, i32
  }
  func.func @transform_1(%arg0: i32) -> (i32, i32) {
    %c0_i32 = arith.constant 0 : i32
    %c0_i32_0 = arith.constant 0 : i32
    %c0_i32_1 = arith.constant 0 : i32
    return %c0_i32, %c0_i32_0 : i32, i32
  }
  func.func @transform_2(%arg0: i32) -> (i32, i32) {
    %c0_i32 = arith.constant 0 : i32
    %c0_i32_0 = arith.constant 0 : i32
    %c0_i32_1 = arith.constant 0 : i32
    return %c0_i32, %c0_i32_0 : i32, i32
  }
  func.func @transform_3(%arg0: i32) -> (i32, i32) {
    %c0_i32 = arith.constant 0 : i32
    %c0_i32_0 = arith.constant 0 : i32
    return %c0_i32, %arg0 : i32, i32
  }
}

</mosaic_0001>

<bundles_post_ra>
// kernel: tpu_custom_call.1
= control target key start
LH: loop header
LB: loop body
LE: loop exit
PB: predicated region body
PF: predicated region fallthrough
CT: control target
= control target key end

     0   :  { %v464_v1 = vmov 1   ;;  %v465_v2 = vmov 0   ;;  %s616_s0 = inlined_call_operand.vmem [shape: f32[4,128], index: 0, kind: input, shape index: {}]   ;;  %s617_s1 = inlined_call_operand.vmem [shape: f32[16,4], index: 1, kind: input, shape index: {}]   ;;  %s618_s2 = inlined_call_operand.vmem [shape: f32[4,1], index: 2, kind: input, shape index: {}]   ;;  %s619_s3 = inlined_call_operand.hbm [shape: f32[1,128], index: 3, kind: output, shape index: {}]  }
   0x1   :  { %v18_v0 = vld [vmem:[%s617_s1] sm:$0xff]  ;;  %394 = vset.pattern.permute.xlu1 %v464_v1  ;;  %393 = vset.pattern.permute.xlu0 %v465_v2 }
   0x2   :  { %8 = vsyncpa [#allocation5], 0  ;;  %37 = vperm.xlu1 %394, %v18_v0   ;;  %22 = vperm.xlu0 %393, %v18_v0   ;;  %v19_v3 = vld [vmem:[%s617_s1 + $0x8] sm:$0xff]  ;;  %v466_v4 = vmov 2   ;;  %v467_v5 = vmov 3   ;;  %v30_v7 = vlaneseq  ;;  %v523_v40 = vmov 0.0  }
   0x3   :  { %v500_v6 = vld [vmem:[%s616_s0] sm:$0xf]  ;;  %v525_v41 = vmov 0.0   ;;  %s527_s0 = smov 0  }
   0x4   :  { %399 = vrcp.f32 %v500_v6  ;;  %v503_v8 = vshrl.u32 %v30_v7, 7 }
   0x6   :  { %41 = vperm.xlu1 %394, %v19_v3   ;;  %27 = vperm.xlu0 %393, %v19_v3   ;;  %v46_v11 = vsub.s32 1, %v503_v8  ;;  %v32_v12 = vsub.s32 0, %v503_v8  ;;  %v62_v14 = vsub.s32 2, %v503_v8  ;;  %v78_v20 = vsub.s32 3, %v503_v8 }
   0xa   :  { %396 = vset.pattern.permute.xlu1 %v466_v4  ;;  %395 = vset.pattern.permute.xlu0 %v466_v4 }
   0xb   :  { %57 = vperm.xlu1 %396, %v19_v3   ;;  %53 = vperm.xlu0 %395, %v18_v0  }
   0xf   :  { %397 = vset.pattern.permute.xlu1 %v467_v5  ;;  %398 = vset.pattern.permute.xlu0 %v467_v5 }
  0x10   :  { %69 = vperm.xlu1 %397, %v18_v0   ;;  %73 = vperm.xlu0 %398, %v19_v3  }
  0x11   :  { %v400_v13 = vpop.eup %399 }
  0x12   :  { %v47_v17 = vrot.slane %v400_v13, %v46_v11  ;;  %v33_v18 = vrot.slane %v400_v13, %v32_v12  ;;  %v63_v19 = vrot.slane %v400_v13, %v62_v14  ;;  %v79_v29 = vrot.slane %v400_v13, %v78_v20 }
  0x7d   :  { %v38_v9 = vpop.permute.xlu1 %37  ;;  %v23_v10 = vpop.permute.xlu0 %22 }
  0x7e   :  { %v48_v21 = vmul.f32 %v47_v17, %v38_v9  ;;  %v34_v22 = vmul.f32 %v33_v18, %v23_v10 }
  0x80   :  { %v50_v30 = vmax.f32 %v34_v22, %v48_v21 }
  0x81   :  { %v42_v15 = vpop.permute.xlu1 %41  ;;  %v28_v16 = vpop.permute.xlu0 %27 }
  0x82   :  { %v49_v23 = vmul.f32 %v47_v17, %v42_v15  ;;  %v35_v24 = vmul.f32 %v33_v18, %v28_v16 }
  0x84   :  { %v51_v31 = vmax.f32 %v35_v24, %v49_v23 }
  0x86   :  { %v58_v25 = vpop.permute.xlu1 %57  ;;  %v54_v26 = vpop.permute.xlu0 %53 }
  0x87   :  { %v65_v27 = vmul.f32 %v63_v19, %v58_v25  ;;  %v64_v28 = vmul.f32 %v63_v19, %v54_v26 }
  0x89   :  { %v67_v34 = vmax.f32 %v51_v31, %v65_v27  ;;  %v66_v35 = vmax.f32 %v50_v30, %v64_v28 }
  0x8b   :  { %v70_v32 = vpop.permute.xlu1 %69  ;;  %v74_v33 = vpop.permute.xlu0 %73 }
  0x8c   :  { %v80_v36 = vmul.f32 %v79_v29, %v70_v32  ;;  %v81_v37 = vmul.f32 %v79_v29, %v74_v33 }
  0x8e   :  { %v517_v38 = vmax.f32 %v66_v35, %v80_v36  ;;  %v519_v39 = vmax.f32 %v67_v34, %v81_v37 }
  0x90   :  { %84 = vst [vmem:[#allocation2] sm:$0xff] %v517_v38  ;;  %85 = vst [vmem:[#allocation2 + $0x8] sm:$0xff] %v519_v39 }
  0x91 LB: > { %s346_s1 = sshll.u32 %s462_s0, 3  ;;  %v175_v42 = vsub.s32 4, %v503_v8  ;;  %v194_v43 = vsub.s32 5, %v503_v8  ;;  %v213_v44 = vsub.s32 6, %v503_v8  ;;  %v232_v45 = vsub.s32 7, %v503_v8  ;;  %s91_s0 = sadd.s32 1, %s462_s0   ;;  %s462_s0 = sphi %s527_s0, %s91_s0   ;;  %v458_v41 = vphi %v525_v41, %v621_v41   ;;  %v454_v40 = vphi %v523_v40, %v620_v40  }
  0x92   : > { %s95_s18 = scalar_lea.vmem [#allocation2], %s346_s1  ;;  %v468_v55 = vmov 0.0   ;;  %vm249_vm10 = vcmask 1040384   ;;  %vm251_vm12 = vcmask 1041408   ;;  %s263_s19 = scalar_lea.vmem [#allocation3], %s346_s1 }
  0x93   : > { %p88_p0 = scmp.ge.s32.totalorder %s91_s0, 2  }
  0x94   :  { %401 = vset.pattern.permute.xlu0 (%p88_p0), %v465_v2 }
  0x97   : > { %v96_v46 = vld [vmem:[%s95_s18] sm:$0xff] }
  0x98   : > { %v100_v47 = vrot.slane %v96_v46, %v32_v12  ;;  %v119_v48 = vrot.slane %v96_v46, %v46_v11  ;;  %v138_v49 = vrot.slane %v96_v46, %v62_v14  ;;  %v157_v50 = vrot.slane %v96_v46, %v78_v20 }
  0x99   : > { %v176_v51 = vrot.slane %v96_v46, %v175_v42  ;;  %v549_v52 = vrot.slane %v96_v46, %v194_v43  ;;  %v551_v53 = vrot.slane %v96_v46, %v213_v44  ;;  %v553_v54 = vrot.slane %v96_v46, %v232_v45 }
  0x9a   : > { %vm101_vm0 = vcmp.le.f32.partialorder %v100_v47, %v517_v38  ;;  %vm102_vm1 = vcmp.le.f32.partialorder %v100_v47, %v519_v39  ;;  %vm120_vm2 = vcmp.le.f32.partialorder %v119_v48, %v517_v38  ;;  %vm121_vm3 = vcmp.le.f32.partialorder %v119_v48, %v519_v39 }
  0x9b   : > { %v347_v56 = vsel %vm101_vm0, 1.0, %v468_v55  ;;  %v348_v57 = vsel %vm102_vm1, 1.0, %v468_v55  ;;  %v349_v58 = vsel %vm120_vm2, 1.0, %v468_v55  ;;  %v350_v59 = vsel %vm121_vm3, 1.0, %v468_v55 }
  0x9c   : > { %v107_v60 = vadd.f32 %v348_v57, %v347_v56  ;;  %v114_v61 = vadd.f32 %v458_v41, %v347_v56  ;;  %v115_v62 = vadd.f32 %v454_v40, %v348_v57  ;;  %v126_v63 = vadd.f32 %v350_v59, %v349_v58 }
  0x9d   : > { %vm139_vm4 = vcmp.le.f32.partialorder %v138_v49, %v517_v38  ;;  %vm140_vm5 = vcmp.le.f32.partialorder %v138_v49, %v519_v39  ;;  %vm158_vm6 = vcmp.le.f32.partialorder %v157_v50, %v517_v38  ;;  %vm159_vm7 = vcmp.le.f32.partialorder %v157_v50, %v519_v39 }
  0x9e   : > { %v108_v0 = vrot.slane %v107_v60, 4  ;;  %v127_v1 = vrot.slane %v126_v63, 4  ;;  %v133_v3 = vadd.f32 %v349_v58, %v114_v61  ;;  %v134_v4 = vadd.f32 %v350_v59, %v115_v62 }
  0x9f   : > { %v351_v5 = vsel %vm139_vm4, 1.0, %v468_v55  ;;  %v352_v7 = vsel %vm140_vm5, 1.0, %v468_v55  ;;  %v353_v9 = vsel %vm158_vm6, 1.0, %v468_v55  ;;  %v354_v10 = vsel %vm159_vm7, 1.0, %v468_v55 }
  0xa0   : > { %v109_v13 = vadd.f32 %v108_v0, %v107_v60  ;;  %v128_v15 = vadd.f32 %v127_v1, %v126_v63  ;;  %v145_v16 = vadd.f32 %v352_v7, %v351_v5  ;;  %v152_v17 = vadd.f32 %v351_v5, %v133_v3 }
  0xa1   : > { %v153_v18 = vadd.f32 %v352_v7, %v134_v4  ;;  %v164_v19 = vadd.f32 %v354_v10, %v353_v9  ;;  %vm177_vm8 = vcmp.le.f32.partialorder %v176_v51, %v517_v38  ;;  %vm178_vm9 = vcmp.le.f32.partialorder %v176_v51, %v519_v39 }
  0xa2   : > { %v110_v21 = vrot.slane %v109_v13, 2  ;;  %v129_v22 = vrot.slane %v128_v15, 2  ;;  %v146_v23 = vrot.slane %v145_v16, 4  ;;  %v171_v24 = vadd.f32 %v353_v9, %v152_v17 }
  0xa3   : > { %v165_v25 = vrot.slane %v164_v19, 4  ;;  %v172_v26 = vadd.f32 %v354_v10, %v153_v18  ;;  %v355_v27 = vsel %vm177_vm8, 1.0, %v468_v55  ;;  %v356_v28 = vsel %vm178_vm9, 1.0, %v468_v55 }
  0xa4   : > { %v111_v29 = vadd.f32 %v110_v21, %v109_v13  ;;  %v130_v30 = vadd.f32 %v129_v22, %v128_v15  ;;  %v147_v31 = vadd.f32 %v146_v23, %v145_v16  ;;  %v183_v32 = vadd.f32 %v356_v28, %v355_v27 }
  0xa5   : > { %v166_v33 = vadd.f32 %v165_v25, %v164_v19  ;;  %v190_v34 = vadd.f32 %v355_v27, %v171_v24  ;;  %v191_v35 = vadd.f32 %v356_v28, %v172_v26  ;;  %vm196_vm11 = vcmp.le.f32.partialorder %v549_v52, %v517_v38 }
  0xa6   : > { %v112_v36 = vrot.slane %v111_v29, 1  ;;  %v131_v37 = vrot.slane %v130_v30, 1  ;;  %v148_v40 = vrot.slane %v147_v31, 2  ;;  %v184_v41 = vrot.slane %v183_v32, 4 }
  0xa7   : > { %v167_v42 = vrot.slane %v166_v33, 2  ;;  %vm197_vm13 = vcmp.le.f32.partialorder %v549_v52, %v519_v39  ;;  %v357_v43 = vsel %vm196_vm11, 1.0, %v468_v55  ;;  %vm215_vm14 = vcmp.le.f32.partialorder %v551_v53, %v517_v38 }
  0xa8   : > { %v113_v44 = vadd.f32 %v112_v36, %v111_v29  ;;  %v132_v45 = vadd.f32 %v131_v37, %v130_v30  ;;  %v149_v46 = vadd.f32 %v148_v40, %v147_v31  ;;  %v185_v47 = vadd.f32 %v184_v41, %v183_v32 }
  0xa9   : > { %v168_v48 = vadd.f32 %v167_v42, %v166_v33  ;;  %v358_v49 = vsel %vm197_vm13, 1.0, %v468_v55  ;;  %v209_v50 = vadd.f32 %v357_v43, %v190_v34  ;;  %vm216_vm15 = vcmp.le.f32.partialorder %v551_v53, %v519_v39 }
  0xaa   : > { %v150_v51 = vrot.slane %v149_v46, 1  ;;  %v186_v56 = vrot.slane %v185_v47, 2  ;;  %v202_v57 = vadd.f32 %v358_v49, %v357_v43  ;;  %v210_v52 = vadd.f32 %v358_v49, %v191_v35 }
  0xab   : > { %v169_v58 = vrot.slane %v168_v48, 1  ;;  %v359_v59 = vsel %vm215_vm14, 1.0, %v468_v55  ;;  %v360_v60 = vsel %vm216_vm15, 1.0, %v468_v55  ;;  %vm234_vm0 = vcmp.le.f32.partialorder %v553_v54, %v517_v38 }
  0xac   : > { %v151_v61 = vadd.f32 %v150_v51, %v149_v46  ;;  %v187_v62 = vadd.f32 %v186_v56, %v185_v47  ;;  %v203_v63 = vrot.slane %v202_v57, 4  ;;  %v221_v0 = vadd.f32 %v360_v60, %v359_v59 }
  0xad   : > { %v170_v1 = vadd.f32 %v169_v58, %v168_v48  ;;  %v228_v3 = vadd.f32 %v359_v59, %v209_v50  ;;  %v229_v4 = vadd.f32 %v360_v60, %v210_v52  ;;  %vm235_vm1 = vcmp.le.f32.partialorder %v553_v54, %v519_v39 }
  0xae   : > { %v188_v53 = vrot.slane %v187_v62, 1  ;;  %v204_v5 = vadd.f32 %v203_v63, %v202_v57  ;;  %v222_v7 = vrot.slane %v221_v0, 4  ;;  %v361_v9 = vsel %vm234_vm0, 1.0, %v468_v55 }
  0xaf   : > { %v362_v10 = vsel %vm235_vm1, 1.0, %v468_v55  ;;  %v247_v13 = vadd.f32 %v361_v9, %v228_v3   ;;  %v250_v15 = vsel %vm249_vm10, %v113_v44, %v132_v45  ;;  %vm253_vm2 = vcmask 1042432  }
  0xb0   : > { %v205_v16 = vrot.slane %v204_v5, 2  ;;  %v223_v17 = vadd.f32 %v222_v7, %v221_v0  ;;  %v240_v18 = vadd.f32 %v362_v10, %v361_v9  ;;  %v189_v19 = vadd.f32 %v188_v53, %v187_v62 }
  0xb1   : > { %v248_v21 = vadd.f32 %v362_v10, %v229_v4   ;;  %v252_v22 = vsel %vm251_vm12, %v250_v15, %v151_v61  ;;  %vm255_vm3 = vcmask 1043456   ;;  %vm257_vm4 = vcmask 1044480  }
  0xb2   : > { %v206_v54 = vadd.f32 %v205_v16, %v204_v5  ;;  %v224_v23 = vrot.slane %v223_v17, 2  ;;  %v241_v24 = vrot.slane %v240_v18, 4  ;;  %v254_v25 = vsel %vm253_vm2, %v252_v22, %v170_v1 }
  0xb3   : > { %v256_v28 = vsel %vm255_vm3, %v254_v25, %v189_v19  ;;  %vm259_vm5 = vcmask 1045504   ;;  %vm261_vm6 = vcmask 1046528   ;;  %v621_v41 = vmov %v247_v13 }
  0xb4   : > { %v207_v26 = vrot.slane %v206_v54, 1  ;;  %v225_v27 = vadd.f32 %v224_v23, %v223_v17  ;;  %v242_v55 = vadd.f32 %v241_v24, %v240_v18  ;;  %v300_v41 = vld [vmem:[%s618_s2] sm:$0xf] (%p88_p0)  ;;  %v287_v12 = vmul.f32 (%p88_p0), 1.442695, %v517_v38  ;;  %s469_s2 = smov (%p88_p0), [#allocation4]  }
  0xb5   :  { %303 = vperm.xlu0 (%p88_p0), %401, %v300_v41   ;;  %v289_v14 = vmul.f32 (%p88_p0), 1.442695, %v519_v39  ;;  %s323_s22 = sshll.u32 (%p88_p0), %s469_s2, 4  ;;  %s324_s22 = int_to_ptr.vmem [resolvable:$true] %s323_s22 }
  0xb6   : > { %v208_v29 = vadd.f32 %v207_v26, %v206_v54  ;;  %v226_v30 = vrot.slane %v225_v27, 1  ;;  %v243_v31 = vrot.slane %v242_v55, 2  ;;  %s418_s23 = scalar_lea.vmem (%p88_p0), %s324_s22, 16  ;;  %s422_s24 = scalar_lea.vmem (%p88_p0), %s324_s22, 32 }
  0xb7   :  { %p419_p1 = scmp.ne.s32.totalorder (%p88_p0), %s324_s22, %s418_s23  ;;  %p423_p2 = scmp.lt.s32.totalorder (%p88_p0), %s324_s22, %s324_s22 }
  0xb8   : > { %v227_v32 = vadd.f32 %v226_v30, %v225_v27  ;;  %v244_v33 = vadd.f32 %v243_v31, %v242_v55  ;;  %v258_v34 = vsel %vm257_vm4, %v256_v28, %v208_v29  ;;  %p424_p3 = scmp.lt.s32.totalorder (%p88_p0), %s422_s24, %s418_s23 }
  0xba   : > { %v245_v35 = vrot.slane %v244_v33, 1  ;;  %v260_v36 = vsel %vm259_vm5, %v258_v34, %v227_v32  ;;  %p425_p4 = por (%p88_p0), %p424_p3, %p423_p2 }
  0xbb   :  { %90 = sbr.rel (!%p88_p0) target bundleno = 145 (0x91), region = 41 }
  0xbc   : > { %v246_v37 = vadd.f32 %v245_v35, %v244_v33  ;;  %p426_p5 = pnand (%p88_p0), %p425_p4, %p419_p1 }
  0xbe   : > { %v262_v40 = vsel %vm261_vm6, %v260_v36, %v246_v37 }
  0xbf   : > { %264 = vst [vmem:[%s263_s19] sm:$0xff] %v262_v40  ;;  %v620_v40 = vmov %v248_v21 }
  0xc6   :  { %v265_v42 = vld [vmem:[#allocation3] sm:$0xff]  ;;  %v266_v43 = vld [vmem:[#allocation3 + $0x8] sm:$0xff] }
  0xc7   :  { %v267_v44 = vsub.f32 16.0, %v265_v42  ;;  %v268_v45 = vsub.f32 16.0, %v266_v43 }
  0xc9   :  { %v273_v46 = vmax.f32 %v267_v44, 1.0  ;;  %v274_v47 = vmax.f32 %v268_v45, 1.0  ;;  %v269_v48 = vsub.f32 %v247_v13, %v267_v44  ;;  %v270_v49 = vsub.f32 %v248_v21, %v268_v45 }
  0xcb   :  { %402 = vrcp.f32 %v273_v46  ;;  %v271_v50 = vadd.f32 %v269_v48, %v267_v44  ;;  %v272_v56 = vadd.f32 %v270_v49, %v268_v45 }
  0xcc   :  { %404 = vrcp.f32 %v274_v47 }
  0xd8   :  { %v403_v51 = vpop.eup %402 }
  0xd9   :  { %v405_v8 = vpop.eup %404  ;;  %v276_v2 = vmul.f32 %v403_v51, %v271_v50 }
  0xda   :  { %v278_v11 = vmul.f32 %v405_v8, %v272_v56 }
  0xdb   :  { %406 = vlog2.f32 %v276_v2 }
  0xdc   :  { %408 = vlog2.f32 %v278_v11 }
  0xdd   :  { %410 = vrcp.f32 %v269_v48 }
  0xde   :  { %412 = vrcp.f32 %v270_v49 }
  0xdf   :  { %414 = vpow2.f32 %v287_v12 }
  0xe0   :  { %416 = vpow2.f32 %v289_v14 }
  0xe8   :  { %v407_v20 = vpop.eup %406 }
  0xe9   :  { %v409_v57 = vpop.eup %408  ;;  %v280_v58 = vmul.f32 0.6931472, %v407_v20 }
  0xea   :  { %v411_v52 = vpop.eup %410  ;;  %v282_v59 = vmul.f32 0.6931472, %v409_v57 }
  0xeb   :  { %v413_v60 = vpop.eup %412  ;;  %v284_v62 = vmul.f32 %v411_v52, %v280_v58 }
  0xec   :  { %v415_v61 = vpop.eup %414  ;;  %v286_v63 = vmul.f32 %v413_v60, %v282_v59 }
  0xed   :  { %v417_v0 = vpop.eup %416  ;;  %v291_v1 = vmul.f32 %v415_v61, %v284_v62 }
  0xee   :  { %v292_v3 = vmul.f32 %v417_v0, %v286_v63 }
  0xf0   :  { %v293_v4 = vadd.f32 %v292_v3, %v291_v1 }
  0xf2   :  { %v294_v53 = vrot.slane %v293_v4, 4 }
  0xf4   :  { %v295_v38 = vadd.f32 %v294_v53, %v293_v4 }
  0xf6   :  { %v296_v7 = vrot.slane %v295_v38, 2 }
  0xf8   :  { %v297_v13 = vadd.f32 %v296_v7, %v295_v38 }
  0xfa   :  { %v298_v17 = vrot.slane %v297_v13, 1 }
  0xfc   :  { %v299_v19 = vadd.f32 %v298_v17, %v297_v13 }
 0x130   :  { %v304_v5 = vpop.permute.xlu0 %303 }
 0x131   :  { %v306_v39 = vmul.f32 %v304_v5, %v500_v6 }
 0x133   :  { %v308_v9 = vsel %vm255_vm3, %v306_v39, 0.0 }
 0x134   :  { %v309_v10 = vrot.slane %v308_v9, 4 }
 0x136   :  { %v310_v15 = vadd.f32 %v309_v10, %v308_v9 }
 0x138   :  { %v311_v16 = vrot.slane %v310_v15, 2 }
 0x13a   :  { %v312_v18 = vadd.f32 %v311_v16, %v310_v15 }
 0x13c   :  { %v313_v21 = vrot.slane %v312_v18, 1 }
 0x13e   :  { %v314_v22 = vadd.f32 %v313_v21, %v312_v18 }
 0x140   :  { %v315_v54 = vadd.f32 %v314_v22, %v299_v19 }
 0x142   :  { %316 = vst [vmem:[#allocation4] sm:$0x1] %v315_v54 }
 0x143   :  { %429 = shalt.err (!%p426_p5)
}
 0x144   :  { %326 = dma.vmem_to_hbm [thread:$0]  %s324_s22, 16, %s619_s3, [#allocation5]  }
 0x145   :  { %450 = dma.done.wait [#allocation5], 16  }
 0x146   :  { %451 = vsyncadd [#allocation5], 4294967280 }
 0x147   :  { %330 = vsyncpa [#allocation5], 1 }

</bundles_post_ra>
